<compile_context>
chip_gen: v5e
topology: v5e:2x2
jax: 0.10.0
libtpu: 0.0.40
codegen_flags: <defaults>
</compile_context>

<pallas_src>
import jax
import jax.numpy as jnp
from jax.experimental import pallas as pl
from jax.experimental.pallas import tpu as pltpu


def _round_up(v, m):
    return (v + m - 1) // m * m


def _fused_cnn_kernel(p_ref, wbd_ref, bc_ref, w1_ref, b1_ref, w2_ref, b2_ref, o_ref):
    """conv (block-diag im2col matmul) + bias + ReLU + 2x2 maxpool + fc1 + ReLU + fc2."""
    np_rows = o_ref.shape[0]                 # padded batch (multiple of 8)
    n_quad = p_ref.shape[0] // np_rows       # pool*pool quadrants (4)

    # Conv as a single MXU matmul against the block-diagonal im2col weight.
    # rows = (quadrant, n), lanes = (pooled position, filter)  == FC flatten order.
    conv = jnp.dot(p_ref[...], wbd_ref[...], preferred_element_type=jnp.float32)
    conv = jnp.maximum(conv + bc_ref[...], 0.0)            # bias + ReLU in f32 (VPU)

    # 2x2 max pool == elementwise max of the quadrant row blocks (8-row aligned slices).
    pooled = conv[0:np_rows]
    for q in range(1, n_quad):
        pooled = jnp.maximum(pooled, conv[q * np_rows:(q + 1) * np_rows])

    # fc1 + ReLU; dropout has p=0.0 -> identity. bf16 MXU operands, f32 accumulate.
    h = jnp.dot(pooled.astype(w1_ref.dtype), w1_ref[...],
                preferred_element_type=jnp.float32) + b1_ref[...]
    h = jnp.maximum(h, 0.0)

    # fc2 -> full (8,128) lane-dense store.
    o_ref[...] = jnp.dot(h.astype(w2_ref.dtype), w2_ref[...],
                         preferred_element_type=jnp.float32) + b2_ref[...]


def classification_cnn_forward(x, params, *, stride_conv=1, pool=2, stride_pool=2):
    wc, bc, w1, b1, w2, b2 = (params[k] for k in ("wc", "bc", "w1", "b1", "w2", "b2"))
    N, C, H, W = x.shape
    F, _, kh, kw = wc.shape
    Ho = (H - kh) // stride_conv + 1
    Wo = (W - kw) // stride_conv + 1
    Hp = (Ho - pool) // stride_pool + 1
    Wp = (Wo - pool) // stride_pool + 1
    P = Hp * Wp                      # pooled spatial positions
    K = C * kh * kw                  # im2col contraction length
    H1 = w1.shape[0]                 # hidden units
    NC = w2.shape[0]                 # num classes
    H1p = _round_up(H1, 128)
    NCp = _round_up(NC, 128)
    Np = _round_up(N, 8)
    assert w1.shape[1] == P * F      # module hard-codes this to 192

    # TODO(synk): the PyTorch module adds `mean_image` when x.min() < 0; mean_image defaults
    # to None, so this data-dependent branch is dropped and inputs are assumed nonnegative.

    # ---- im2col, grouped directly by 2x2-pool quadrant (no 5D transpose) ----
    x_nhwc = jnp.transpose(x, (0, 2, 3, 1))                             # (N,H,W,C), tiny
    pat = jnp.concatenate(
        [x_nhwc[:, dy:dy + Ho * stride_conv:stride_conv,
                   dx:dx + Wo * stride_conv:stride_conv, :]
         for dy in range(kh) for dx in range(kw)],
        axis=-1)                                                        # (N,Ho,Wo,K), lanes=(dy,dx,c)
    quads = jnp.stack(
        [pat[:, di::stride_pool, dj::stride_pool, :][:, :Hp, :Wp, :]
         for di in range(pool) for dj in range(pool)],
        axis=0)                                                         # (pool^2,N,Hp,Wp,K)
    quads = jnp.pad(quads, ((0, 0), (0, Np - N), (0, 0), (0, 0), (0, 0)))
    patches = quads.reshape(pool * pool * Np, P * K)                    # rows=(q,n), lanes=(p,k)

    # ---- weights reshaped / permuted / padded once at trace time (free vs. activation reorders) ----
    w_mat = wc.transpose(2, 3, 1, 0).reshape(K, F)                      # rows ordered (dy,dx,c)
    w_bd = jnp.kron(jnp.eye(P, dtype=w_mat.dtype), w_mat)               # (P*K, P*F) block-diagonal
    b_bd = jnp.tile(bc, P).reshape(1, P * F)                            # lane p*F+f -> bc[f]
    # fc1 input rows permuted from PyTorch (f,hp,wp) flatten order to the kernel's (p,f) order.
    w1_r = w1.reshape(H1, F, Hp, Wp).transpose(2, 3, 1, 0).reshape(P * F, H1)
    w1_p = jnp.pad(w1_r, ((0, 0), (0, H1p - H1)))
    b1_p = jnp.pad(b1, (0, H1p - H1)).reshape(1, H1p)
    w2_p = jnp.pad(w2.T, ((0, H1p - H1), (0, NCp - NC)))
    b2_p = jnp.pad(b2, (0, NCp - NC)).reshape(1, NCp)

    # bf16 on MXU operands only (native on v6e/v7x); biases / elementwise / accum stay f32.
    mxu_dt = jnp.bfloat16
    patches = patches.astype(mxu_dt)
    w_bd = w_bd.astype(mxu_dt)
    w1_p = w1_p.astype(mxu_dt)
    w2_p = w2_p.astype(mxu_dt)

    flops = 2 * (patches.shape[0] * patches.shape[1] * w_bd.shape[1]
                 + Np * (P * F) * H1p + Np * H1p * NCp)
    bytes_accessed = (patches.size * 2 + w_bd.size * 2 + w1_p.size * 2 + w2_p.size * 2
                      + b_bd.size * 4 + b1_p.size * 4 + b2_p.size * 4 + Np * NCp * 4)

    vmem = pltpu.MemorySpace.VMEM
    out = pl.pallas_call(
        _fused_cnn_kernel,
        out_shape=jax.ShapeDtypeStruct((Np, NCp), jnp.float32),
        in_specs=[pl.BlockSpec(memory_space=vmem)] * 7,
        out_specs=pl.BlockSpec(memory_space=vmem),
        compiler_params=pltpu.CompilerParams(vmem_limit_bytes=8 * 1024 * 1024),
        cost_estimate=pl.CostEstimate(flops=flops, transcendentals=0,
                                      bytes_accessed=bytes_accessed),
    )(patches, w_bd, b_bd, w1_p, b1_p, w2_p, b2_p)
    return out[:N, :NC]


if __name__ == "__main__":
    N, C, H, W = 2, 3, 10, 10
    F, K = 12, 3
    HIDDEN, NUM_CLASSES = 100, 10

    key = jax.random.PRNGKey(0)
    k = jax.random.split(key, 7)
    # nonnegative inputs (mean_image defaults to None in the module)
    x = jax.random.uniform(k[0], (N, C, H, W), jnp.float32)
    params = dict(
        wc=0.01 * jax.random.normal(k[1], (F, C, K, K), jnp.float32),
        bc=0.01 * jax.random.normal(k[2], (F,), jnp.float32),
        w1=0.01 * jax.random.normal(k[3], (HIDDEN, 192), jnp.float32),
        b1=0.01 * jax.random.normal(k[4], (HIDDEN,), jnp.float32),
        w2=0.01 * jax.random.normal(k[5], (NUM_CLASSES, HIDDEN), jnp.float32),
        b2=0.01 * jax.random.normal(k[6], (NUM_CLASSES,), jnp.float32),
    )

    fwd = jax.jit(classification_cnn_forward)
    out = jax.block_until_ready(fwd(x, params))
    assert out.shape == (N, NUM_CLASSES)

    # Pure-JAX f32 reference for a sanity check of the forward-pass semantics.
    def ref_forward(x, p):
        y = jax.lax.conv_general_dilated(
            x, p["wc"], (1, 1), "VALID",
            dimension_numbers=("NCHW", "OIHW", "NCHW")) + p["bc"][None, :, None, None]
        y = jnp.maximum(y, 0.0)
        n, f, ho, wo = y.shape
        y = y.reshape(n, f, ho // 2, 2, wo // 2, 2).max(axis=(3, 5)).reshape(n, -1)
        h = jnp.maximum(y @ p["w1"].T + p["b1"], 0.0)
        return h @ p["w2"].T + p["b2"]

    ref = ref_forward(x, params)
    max_err = float(jnp.max(jnp.abs(out - ref)))
    assert jnp.allclose(out, ref, atol=1e-2, rtol=1e-2), max_err
    print("KERNEL_OK")
</pallas_src>

<mosaic_0001>
module attributes {stable_mosaic.version = 11 : i64} {
  func.func @_fused_cnn_kernel(%arg0: memref<32x432xbf16, #tpu.memory_space<vmem>>, %arg1: memref<432x192xbf16, #tpu.memory_space<vmem>>, %arg2: memref<1x192xf32, #tpu.memory_space<vmem>>, %arg3: memref<192x128xbf16, #tpu.memory_space<vmem>>, %arg4: memref<1x128xf32, #tpu.memory_space<vmem>>, %arg5: memref<128x128xbf16, #tpu.memory_space<vmem>>, %arg6: memref<1x128xf32, #tpu.memory_space<vmem>>, %arg7: memref<8x128xf32, #tpu.memory_space<vmem>>) attributes {dimension_semantics = [], scalar_prefetch = 0 : i64, scratch_operands = 0 : i64, tpu.core_type = #tpu.core_type<tc>} {
    %c0 = arith.constant 0 : index
    %c0_0 = arith.constant 0 : index
    %0 = vector.load %arg0[%c0, %c0_0] : memref<32x432xbf16, #tpu.memory_space<vmem>>, vector<32x432xbf16>
    %c0_1 = arith.constant 0 : index
    %c0_2 = arith.constant 0 : index
    %1 = vector.load %arg1[%c0_1, %c0_2] : memref<432x192xbf16, #tpu.memory_space<vmem>>, vector<432x192xbf16>
    %cst = arith.constant dense<0.000000e+00> : vector<32x192xf32>
    %2 = tpu.matmul %0, %1, %cst {dimension_numbers = #tpu.dot_dimension_numbers<[1], [0], [0], [1], [0, 0, 1, 1], [], []>} : vector<32x432xbf16>, vector<432x192xbf16>, vector<32x192xf32> -> vector<32x192xf32>
    %c0_3 = arith.constant 0 : index
    %c0_4 = arith.constant 0 : index
    %3 = vector.load %arg2[%c0_3, %c0_4] : memref<1x192xf32, #tpu.memory_space<vmem>>, vector<1x192xf32>
    %4 = vector.broadcast %3 : vector<1x192xf32> to vector<32x192xf32>
    %5 = arith.addf %2, %4 : vector<32x192xf32>
    %cst_5 = arith.constant 0.000000e+00 : f32
    %6 = vector.broadcast %cst_5 : f32 to vector<32x192xf32>
    %7 = arith.maximumf %5, %6 : vector<32x192xf32>
    %8 = vector.extract_strided_slice %7 {offsets = [0, 0], sizes = [8, 192], strides = [1, 1]} : vector<32x192xf32> to vector<8x192xf32>
    %9 = vector.extract_strided_slice %7 {offsets = [8, 0], sizes = [8, 192], strides = [1, 1]} : vector<32x192xf32> to vector<8x192xf32>
    %10 = arith.maximumf %8, %9 : vector<8x192xf32>
    %11 = vector.extract_strided_slice %7 {offsets = [16, 0], sizes = [8, 192], strides = [1, 1]} : vector<32x192xf32> to vector<8x192xf32>
    %12 = arith.maximumf %10, %11 : vector<8x192xf32>
    %13 = vector.extract_strided_slice %7 {offsets = [24, 0], sizes = [8, 192], strides = [1, 1]} : vector<32x192xf32> to vector<8x192xf32>
    %14 = arith.maximumf %12, %13 : vector<8x192xf32>
    %15 = arith.truncf %14 : vector<8x192xf32> to vector<8x192xbf16>
    %c0_6 = arith.constant 0 : index
    %c0_7 = arith.constant 0 : index
    %16 = vector.load %arg3[%c0_6, %c0_7] : memref<192x128xbf16, #tpu.memory_space<vmem>>, vector<192x128xbf16>
    %cst_8 = arith.constant dense<0.000000e+00> : vector<8x128xf32>
    %17 = tpu.matmul %15, %16, %cst_8 {dimension_numbers = #tpu.dot_dimension_numbers<[1], [0], [0], [1], [0, 0, 1, 1], [], []>} : vector<8x192xbf16>, vector<192x128xbf16>, vector<8x128xf32> -> vector<8x128xf32>
    %c0_9 = arith.constant 0 : index
    %c0_10 = arith.constant 0 : index
    %18 = vector.load %arg4[%c0_9, %c0_10] : memref<1x128xf32, #tpu.memory_space<vmem>>, vector<1x128xf32>
    %19 = vector.broadcast %18 : vector<1x128xf32> to vector<8x128xf32>
    %20 = arith.addf %17, %19 : vector<8x128xf32>
    %cst_11 = arith.constant 0.000000e+00 : f32
    %21 = vector.broadcast %cst_11 : f32 to vector<8x128xf32>
    %22 = arith.maximumf %20, %21 : vector<8x128xf32>
    %23 = arith.truncf %22 : vector<8x128xf32> to vector<8x128xbf16>
    %c0_12 = arith.constant 0 : index
    %c0_13 = arith.constant 0 : index
    %24 = vector.load %arg5[%c0_12, %c0_13] : memref<128x128xbf16, #tpu.memory_space<vmem>>, vector<128x128xbf16>
    %cst_14 = arith.constant dense<0.000000e+00> : vector<8x128xf32>
    %25 = tpu.matmul %23, %24, %cst_14 {dimension_numbers = #tpu.dot_dimension_numbers<[1], [0], [0], [1], [0, 0, 1, 1], [], []>} : vector<8x128xbf16>, vector<128x128xbf16>, vector<8x128xf32> -> vector<8x128xf32>
    %c0_15 = arith.constant 0 : index
    %c0_16 = arith.constant 0 : index
    %26 = vector.load %arg6[%c0_15, %c0_16] : memref<1x128xf32, #tpu.memory_space<vmem>>, vector<1x128xf32>
    %27 = vector.broadcast %26 : vector<1x128xf32> to vector<8x128xf32>
    %28 = arith.addf %25, %27 : vector<8x128xf32>
    %c0_17 = arith.constant 0 : index
    %c0_18 = arith.constant 0 : index
    %29 = vector.load %arg7[%c0_17, %c0_18] : memref<8x128xf32, #tpu.memory_space<vmem>>, vector<8x128xf32>
    tpu.vector_store %arg7[%c0_17, %c0_18], %28 {strides = array<i32>} : memref<8x128xf32, #tpu.memory_space<vmem>>, vector<8x128xf32>,
    return
  }
}

</mosaic_0001>

<bundles_post_ra>
// kernel: mul.4
= control target key start
LH: loop header
LB: loop body
LE: loop exit
PB: predicated region body
PF: predicated region fallthrough
CT: control target
= control target key end

     0   :  { %vm39_vm0 = vcmask 97280   ;;  %s170_s0 = inlined_call_operand.vmem [shape: f32[3,3,3,12], index: 0, kind: input, shape index: {}]   ;;  %s171_s1 = inlined_call_operand.vmem [shape: f32[27,12], index: 1, kind: output, shape index: {}]  }
   0x1   :  { %v81_v0 = vld [vmem:[%s170_s0 + $0x20] sm:$0xf]  ;;  %v82_v1 = vld [vmem:[%s170_s0 + $0x1c] sm:$0xf]  ;;  %v83_v2 = vld [vmem:[%s170_s0 + $0x18] sm:$0xf] }
   0x2   :  { %7 = vst [vmem:[#allocation0 + $0x10] sm:$0xf] %v81_v0  ;;  %v84_v3 = vld [vmem:[%s170_s0 + $0x14] sm:$0xf]  ;;  %v85_v4 = vld [vmem:[%s170_s0 + $0x10] sm:$0xf] }
   0x3   :  { %11 = vst [vmem:[#allocation0 + $0x40] sm:$0xf] %v82_v1  ;;  %v86_v5 = vld [vmem:[%s170_s0 + $0xc] sm:$0xf]  ;;  %v87_v6 = vld [vmem:[%s170_s0 + $0x8] sm:$0xf] }
   0x4   :  { %15 = vst [vmem:[#allocation0 + $0x28] sm:$0xf] %v83_v2  ;;  %v88_v7 = vld [vmem:[%s170_s0 + $0x4] sm:$0xf]  ;;  %v36_v8 = vld [vmem:[%s170_s0] sm:$0xf] }
   0x5   :  { %19 = vst [vmem:[#allocation0 + $0x30] sm:$0xf] %v84_v3 }
   0x6   :  { %23 = vst [vmem:[#allocation0 + $0x20] sm:$0xf] %v85_v4 }
   0x7   :  { %27 = vst [vmem:[#allocation0 + $0x18] sm:$0xf] %v86_v5 }
   0x8   :  { %31 = vst [vmem:[#allocation0] sm:$0xf] %v87_v6 }
   0x9   :  { %35 = vst [vmem:[#allocation0 + $0x8] sm:$0xf] %v88_v7  ;;  %v77_v16 = vld [vmem:[#allocation0 + $0x10] sm:$0x7]  }
   0xa   :  { %37 = vst [vmem:[#allocation0 + $0x38] sm:$0xf] %v36_v8  ;;  %v72_v9 = vld [vmem:[#allocation0 + $0x40] sm:$0x7]  }
   0xb   :  { %v67_v10 = vld [vmem:[#allocation0 + $0x28] sm:$0x7]   ;;  %95 = vst.msk [vmem:[%s171_s1 + $0x15] sm:$0x7] %vm39_vm0, %v72_v9  }
   0xc   :  { %v62_v11 = vld [vmem:[#allocation0 + $0x30] sm:$0x7]   ;;  %94 = vst.msk [vmem:[%s171_s1 + $0x12] sm:$0x7] %vm39_vm0, %v67_v10  }
   0xd   :  { %v57_v12 = vld [vmem:[#allocation0 + $0x20] sm:$0x7]   ;;  %93 = vst.msk [vmem:[%s171_s1 + $0xf] sm:$0x7] %vm39_vm0, %v62_v11  }
   0xe   :  { %v52_v13 = vld [vmem:[#allocation0 + $0x18] sm:$0x7]   ;;  %92 = vst.msk [vmem:[%s171_s1 + $0xc] sm:$0x7] %vm39_vm0, %v57_v12  }
   0xf   :  { %v47_v14 = vld [vmem:[#allocation0] sm:$0x7]   ;;  %91 = vst.msk [vmem:[%s171_s1 + $0x9] sm:$0x7] %vm39_vm0, %v52_v13  }
  0x10   :  { %v42_v15 = vld [vmem:[#allocation0 + $0x8] sm:$0x7]   ;;  %90 = vst.msk [vmem:[%s171_s1 + $0x6] sm:$0x7] %vm39_vm0, %v47_v14  }
  0x11   :  { %v38_v17 = vld [vmem:[#allocation0 + $0x38] sm:$0x7]   ;;  %89 = vst.msk [vmem:[%s171_s1 + $0x3] sm:$0x7] %vm39_vm0, %v42_v15  }
  0x12   :  { %40 = vst.msk [vmem:[%s171_s1] sm:$0x7] %vm39_vm0, %v38_v17  }
  0x13   :  { %96 = vst.msk [vmem:[%s171_s1 + $0x18] sm:$0x7] %vm39_vm0, %v77_v16  }

// kernel: tile.8
= control target key start
LH: loop header
LB: loop body
LE: loop exit
PB: predicated region body
PF: predicated region fallthrough
CT: control target
= control target key end

     0   :  { %s28_s0 = inlined_call_operand.vmem [shape: f32[12], index: 0, kind: input, shape index: {}]   ;;  %s29_s1 = inlined_call_operand.vmem [shape: f32[16,12], index: 1, kind: output, shape index: {}]  }
   0x1   :  { %v4_v0 = vld [vmem:[%s28_s0] ss:$0 sm:$0xff] }
   0x2   :  { %5 = vst [vmem:[%s29_s1] sm:$0xff] %v4_v0 }
   0x3   :  { %8 = vst [vmem:[%s29_s1 + $0x8] sm:$0xff] %v4_v0 }

// kernel: tile.9
= control target key start
LH: loop header
LB: loop body
LE: loop exit
PB: predicated region body
PF: predicated region fallthrough
CT: control target
= control target key end

     0   :  { %vm9_vm0 = vcmask 64512   ;;  %s151_s12 = smov 120   ;;  %s152_s13 = smov 96   ;;  %vm3_vm1 = vcmask 97280   ;;  %vm13_vm2 = vcmask 31744   ;;  %vm16_vm3 = vcmask 1048512   ;;  %s233_s0 = inlined_call_operand.vmem [shape: f32[16,12], index: 0, kind: input, shape index: {}]   ;;  %s234_s1 = inlined_call_operand.vmem [shape: f32[1,192], index: 1, kind: output, shape index: {}]  }
   0x1   :  { %v119_v0 = vld [vmem:[%s233_s0 + $0xa] sm:$0x1]   ;;  %v122_v3 = vld [vmem:[%s233_s0 + $0x8] sm:$0x1]   ;;  %v124_v4 = vld [vmem:[%s233_s0 + $0x6] sm:$0x1]  }
   0x2   :  { %v120_v1 = vld [vmem:[%s233_s0 + $0xa] sm:$0x1]   ;;  %26 = vrot.lane.b32.xlu1 %v122_v3, %s152_s13  ;;  %s153_s16 = smov 72   ;;  %v121_v5 = vld [vmem:[%s233_s0 + $0x9] sm:$0x1]   ;;  %s154_s21 = smov 108  }
   0x3   :  { %v10_v2 = vsel %vm9_vm0, %v120_v1, %v119_v0  ;;  %38 = vrot.lane.b32.xlu2 %v124_v4, %s153_s16  ;;  %v123_v6 = vld [vmem:[%s233_s0 + $0x7] sm:$0x1]   ;;  %s155_s22 = smov 84   ;;  %v125_v7 = vld [vmem:[%s233_s0 + $0x5] sm:$0x1]   ;;  %s156_s25 = smov 60  }
   0x4   :  { %11 = vrot.lane.b32.xlu0 %v10_v2, %s151_s12  ;;  %v126_v8 = vld [vmem:[%s233_s0 + $0xf] sm:$0x1]   ;;  %v127_v9 = vld [vmem:[%s233_s0 + $0x4] sm:$0x1]   ;;  %s157_s30 = smov 52   ;;  %s158_s2 = smov 48  }
   0x5   :  { %v128_v10 = vld [vmem:[%s233_s0 + $0xe] sm:$0x1]   ;;  %s159_s5 = smov 40   ;;  %v129_v11 = vld [vmem:[%s233_s0 + $0x3] sm:$0x1]   ;;  %s160_s10 = smov 36  }
   0x6   :  { %v130_v12 = vld [vmem:[%s233_s0 + $0xd] sm:$0x1]   ;;  %s161_s11 = smov 28   ;;  %v131_v13 = vld [vmem:[%s233_s0 + $0x2] sm:$0x1]   ;;  %s162_s14 = smov 24  }
   0x7   :  { %v132_v14 = vld [vmem:[%s233_s0 + $0xc] sm:$0x1]   ;;  %v133_v15 = vld [vmem:[%s233_s0 + $0x1] sm:$0x1]   ;;  %s163_s19 = smov 16   ;;  %s164_s20 = smov 12  }
   0x8   :  { %v134_v16 = vld [vmem:[%s233_s0 + $0xb] sm:$0x1]   ;;  %s165_s23 = smov 4   ;;  %v2_v17 = vld [vmem:[%s233_s0] sm:$0x1]   ;;  %vm22_vm4 = vcmask 982880  }
   0x9   :  { %4 = vst.msk [vmem:[#allocation0] sm:$0x1] %vm3_vm1, %v2_v17   ;;  %vm28_vm5 = vcmask 884480   ;;  %vm34_vm6 = vcmask 786080   ;;  %vm40_vm7 = vcmask 687680   ;;  %vm46_vm8 = vcmask 589280  }
   0xa   :  { %32 = vrot.lane.b32.xlu1 %v123_v6, %s155_s22  ;;  %vm52_vm9 = vcmask 523680   ;;  %vm65_vm10 = vcmask 425280   ;;  %vm59_vm11 = vcmask 490880   ;;  %vm72_vm12 = vcmask 392480  }
   0xb   :  { %44 = vrot.lane.b32.xlu2 %v125_v7, %s156_s25  ;;  %vm85_vm13 = vcmask 294080   ;;  %vm78_vm14 = vcmask 326880   ;;  %vm91_vm15 = vcmask 228480   ;;  %vm104_vm0 = vcmask 130080  }
   0xc   :  { %20 = vrot.lane.b32.xlu0 %v121_v5, %s154_s21  ;;  %vm98_vm1 = vcmask 195680  }
  0x12   :  { %57 = vrot.lane.b32.xlu1 %v127_v9, %s158_s2 }
  0x13   :  { %63 = vrot.lane.b32.xlu2 %v128_v10, %s159_s5 }
  0x14   :  { %50 = vrot.lane.b32.xlu0 %v126_v8, %s157_s30 }
  0x1a   :  { %76 = vrot.lane.b32.xlu1 %v130_v12, %s161_s11 }
  0x1b   :  { %83 = vrot.lane.b32.xlu2 %v131_v13, %s162_s14 }
  0x1c   :  { %70 = vrot.lane.b32.xlu0 %v129_v11, %s160_s10 }
  0x22   :  { %96 = vrot.lane.b32.xlu1 %v133_v15, %s164_s20 }
  0x23   :  { %102 = vrot.lane.b32.xlu2 %v134_v16, %s165_s23 }
  0x24   :  { %89 = vrot.lane.b32.xlu0 %v132_v14, %s163_s19 }
  0x5d   :  { %v39_v18 = vpop.permute.xlu2 %38  }
  0x65   :  { %v45_v19 = vpop.permute.xlu2 %44  }
  0x6d   :  { %v64_v20 = vpop.permute.xlu2 %63  }
  0x74   :  { %v27_v22 = vpop.permute.xlu1 %26  }
  0x75   :  { %v84_v23 = vpop.permute.xlu2 %83  }
  0x76   :  { %v12_v21 = vpop.permute.xlu0 %11  }
  0x77   :  { %15 = vst.msk [vmem:[#allocation0 + $0x8] sm:$0x1] %vm13_vm2, %v12_v21  }
  0x78   :  { %17 = vst.msk [vmem:[#allocation0] sm:$0x1] %vm16_vm3, %v12_v21  }
  0x7c   :  { %v33_v25 = vpop.permute.xlu1 %32  }
  0x7d   :  { %v103_v26 = vpop.permute.xlu2 %102  }
  0x7e   :  { %v21_v24 = vpop.permute.xlu0 %20  }
  0x7f   :  { %23 = vst.msk [vmem:[#allocation0] sm:$0x1] %vm22_vm4, %v21_v24  }
  0x80   :  { %29 = vst.msk [vmem:[#allocation0] sm:$0x1] %vm28_vm5, %v27_v22  }
  0x81   :  { %35 = vst.msk [vmem:[#allocation0] sm:$0x1] %vm34_vm6, %v33_v25  }
  0x82   :  { %41 = vst.msk [vmem:[#allocation0] sm:$0x1] %vm40_vm7, %v39_v18  }
  0x83   :  { %47 = vst.msk [vmem:[#allocation0] sm:$0x1] %vm46_vm8, %v45_v19  }
  0x84   :  { %v58_v28 = vpop.permute.xlu1 %57  }
  0x85   :  { %60 = vst.msk [vmem:[#allocation0] sm:$0x1] %vm59_vm11, %v58_v28  }
  0x86   :  { %v51_v27 = vpop.permute.xlu0 %50  }
  0x87   :  { %54 = vst.msk [vmem:[#allocation0 + $0x8] sm:$0x1] %vm52_vm9, %v51_v27  }
  0x88   :  { %67 = vst.msk [vmem:[#allocation0 + $0x8] sm:$0x1] %vm65_vm10, %v64_v20  }
  0x8c   :  { %v77_v30 = vpop.permute.xlu1 %76  }
  0x8d   :  { %80 = vst.msk [vmem:[#allocation0 + $0x8] sm:$0x1] %vm78_vm14, %v77_v30  }
  0x8e   :  { %v71_v29 = vpop.permute.xlu0 %70  }
  0x8f   :  { %73 = vst.msk [vmem:[#allocation0] sm:$0x1] %vm72_vm12, %v71_v29  }
  0x90   :  { %86 = vst.msk [vmem:[#allocation0] sm:$0x1] %vm85_vm13, %v84_v23  }
  0x94   :  { %v97_v32 = vpop.permute.xlu1 %96  }
  0x95   :  { %99 = vst.msk [vmem:[#allocation0] sm:$0x1] %vm98_vm1, %v97_v32  }
  0x96   :  { %v90_v31 = vpop.permute.xlu0 %89  }
  0x97   :  { %93 = vst.msk [vmem:[#allocation0 + $0x8] sm:$0x1] %vm91_vm15, %v90_v31  }
  0x98   :  { %106 = vst.msk [vmem:[#allocation0 + $0x8] sm:$0x1] %vm104_vm0, %v103_v26  }
  0x9c   :  { %v109_v34 = vld [vmem:[#allocation0] sm:$0x1] }
  0x9d   :  { %112 = vst [vmem:[%s234_s1] sm:$0x1] %v109_v34 }
  0x9f   :  { %v114_v33 = vld [vmem:[#allocation0 + $0x8] sm:$0x1] }
  0xa0   :  { %135 = vst [vmem:[%s234_s1 + $0x1] sm:$0x1] %v114_v33 }

// kernel: classification_cnn_forward.1
= control target key start
LH: loop header
LB: loop body
LE: loop exit
PB: predicated region body
PF: predicated region fallthrough
CT: control target
= control target key end

     0   :  { %vm403_vm0 = vcmask 392192   ;;  %vm678_vm1 = vcmask 523264   ;;  %s1721_s1 = inlined_call_operand.vmem [shape: bf16[432,192], index: 1, kind: input, shape index: {}]   ;;  %s1722_s0 = inlined_call_operand.vmem [shape: bf16[32,432], index: 0, kind: input, shape index: {}]   ;;  %s1723_s4 = inlined_call_operand.vmem [shape: f32[1,128], index: 4, kind: input, shape index: {}]   ;;  %s1724_s3 = inlined_call_operand.vmem [shape: bf16[192,128], index: 3, kind: input, shape index: {}]   ;;  %s1725_s2 = inlined_call_operand.vmem [shape: f32[1,192], index: 2, kind: input, shape index: {}]   ;;  %s1726_s6 = inlined_call_operand.vmem [shape: f32[1,128], index: 6, kind: input, shape index: {}]   ;;  %s1727_s5 = inlined_call_operand.vmem [shape: bf16[128,128], index: 5, kind: input, shape index: {}]   ;;  %s1728_s7 = inlined_call_operand.vmem [shape: f32[8,128], index: 7, kind: output, shape index: {}]  }
   0x1   :  { %v886_v0 = vld [vmem:[%s1721_s1 + $0x70] sm:$0xf]  ;;  %v1152_v1 = vld [vmem:[%s1721_s1 + $0x74] sm:$0xf0]  ;;  %v878_v9 = vld [vmem:[%s1721_s1 + $0x60] sm:$0xf] }
   0x2   :  { %v950_v2 = vld [vmem:[%s1721_s1 + $0xf0] sm:$0xf]  ;;  %v887_v3 = vor.u32 %v1152_v1, %v886_v0  ;;  %v1168_v4 = vld [vmem:[%s1721_s1 + $0xf4] sm:$0xf0]  ;;  %v1150_v10 = vld [vmem:[%s1721_s1 + $0x64] sm:$0xf0] }
   0x3   :  { %v1014_v5 = vld [vmem:[%s1721_s1 + $0x170] sm:$0xf]  ;;  %v1184_v6 = vld [vmem:[%s1721_s1 + $0x174] sm:$0xf0]  ;;  %v951_v7 = vor.u32 %v1168_v4, %v950_v2  ;;  %v942_v11 = vld [vmem:[%s1721_s1 + $0xe0] sm:$0xf]  ;;  %v879_v12 = vor.u32 %v1150_v10, %v878_v9 }
   0x4   :  { %v1015_v8 = vor.u32 %v1184_v6, %v1014_v5  ;;  %410 = vmatpush.bf16.msra.mxu0 %v887_v3  ;;  %v1166_v13 = vld [vmem:[%s1721_s1 + $0xe4] sm:$0xf0]  ;;  %v1006_v14 = vld [vmem:[%s1721_s1 + $0x160] sm:$0xf]  ;;  %v870_v20 = vld [vmem:[%s1721_s1 + $0x50] sm:$0xf] }
   0x5   :  { %v1182_v15 = vld [vmem:[%s1721_s1 + $0x164] sm:$0xf0]  ;;  %429 = vmatpush.bf16.msra.mxu1 %v951_v7  ;;  %v943_v16 = vor.u32 %v1166_v13, %v942_v11  ;;  %v1038_v18 = vld [vmem:[%s1721_s1 + $0x1a0] sm:$0xf]  ;;  %v1148_v22 = vld [vmem:[%s1721_s1 + $0x54] sm:$0xf0] }
   0x6   :  { %448 = vmatpush.bf16.msra.mxu2 %v1015_v8  ;;  %v1007_v17 = vor.u32 %v1182_v15, %v1006_v14  ;;  %v1190_v19 = vld [vmem:[%s1721_s1 + $0x1a4] sm:$0xf0]  ;;  %v934_v23 = vld [vmem:[%s1721_s1 + $0xd0] sm:$0xf]  ;;  %v1164_v24 = vld [vmem:[%s1721_s1 + $0xd4] sm:$0xf0]  ;;  %v871_v28 = vor.u32 %v1148_v22, %v870_v20 }
   0x7   :  { %v1039_v21 = vor.u32 %v1190_v19, %v1038_v18  ;;  %v998_v25 = vld [vmem:[%s1721_s1 + $0x150] sm:$0xf]  ;;  %v1180_v26 = vld [vmem:[%s1721_s1 + $0x154] sm:$0xf0]  ;;  %v862_v30 = vld [vmem:[%s1721_s1 + $0x40] sm:$0xf]  ;;  %v935_v32 = vor.u32 %v1164_v24, %v934_v23 }
   0x8   :  { %v1030_v27 = vld [vmem:[%s1721_s1 + $0x190] sm:$0xf]  ;;  %411 = vmatpush.bf16.msra.mxu0 %v879_v12  ;;  %v1188_v29 = vld [vmem:[%s1721_s1 + $0x194] sm:$0xf0]  ;;  %v1146_v31 = vld [vmem:[%s1721_s1 + $0x44] sm:$0xf0]  ;;  %v999_v33 = vor.u32 %v1180_v26, %v998_v25 }
   0x9   :  { %472 = vmatpush.bf16.msra.mxu3 %v1039_v21  ;;  %430 = vmatpush.bf16.msra.mxu1 %v943_v16  ;;  %v1031_v34 = vor.u32 %v1188_v29, %v1030_v27  ;;  %v926_v35 = vld [vmem:[%s1721_s1 + $0xc0] sm:$0xf]  ;;  %v1162_v36 = vld [vmem:[%s1721_s1 + $0xc4] sm:$0xf0]  ;;  %v854_v41 = vld [vmem:[%s1721_s1 + $0x30] sm:$0xf]  ;;  %v863_v42 = vor.u32 %v1146_v31, %v862_v30 }
   0xa   :  { %449 = vmatpush.bf16.msra.mxu2 %v1007_v17  ;;  %v990_v37 = vld [vmem:[%s1721_s1 + $0x140] sm:$0xf]  ;;  %v1178_v38 = vld [vmem:[%s1721_s1 + $0x144] sm:$0xf0]  ;;  %v1144_v44 = vld [vmem:[%s1721_s1 + $0x34] sm:$0xf0]  ;;  %v927_v47 = vor.u32 %v1162_v36, %v926_v35 }
   0xb   :  { %v1022_v39 = vld [vmem:[%s1721_s1 + $0x180] sm:$0xf]  ;;  %v1186_v40 = vld [vmem:[%s1721_s1 + $0x184] sm:$0xf0]  ;;  %v918_v45 = vld [vmem:[%s1721_s1 + $0xb0] sm:$0xf]  ;;  %v991_v48 = vor.u32 %v1178_v38, %v990_v37  ;;  %v855_v57 = vor.u32 %v1144_v44, %v854_v41 }
   0xc   :  { %412 = vmatpush.bf16.msra.mxu0 %v871_v28  ;;  %v1023_v43 = vor.u32 %v1186_v40, %v1022_v39  ;;  %v1160_v46 = vld [vmem:[%s1721_s1 + $0xb4] sm:$0xf0]  ;;  %v1130_v49 = vld [vmem:[%s1722_s0 + $0xc] sm:$0xf]  ;;  %v808_v50 = vld [vmem:[%s1722_s0 + $0x18] sm:$0xf0] }
   0xd   :  { %473 = vmatpush.bf16.msra.mxu3 %v1031_v34  ;;  %431 = vmatpush.bf16.msra.mxu1 %v935_v32  ;;  %v1151_v51 = vld [vmem:[%s1721_s1 + $0x74] sm:$0xf]  ;;  %v982_v52 = vld [vmem:[%s1721_s1 + $0x130] sm:$0xf]  ;;  %v1176_v53 = vld [vmem:[%s1721_s1 + $0x134] sm:$0xf0]  ;;  %v1373_v55 = vor.u32 %v1130_v49, %v808_v50  ;;  %v919_v60 = vor.u32 %v1160_v46, %v918_v45 }
   0xe   :  { %450 = vmatpush.bf16.msra.mxu2 %v999_v33  ;;  %v888_v54 = vld [vmem:[%s1721_s1 + $0x78] sm:$0xf0]  ;;  %v1149_v58 = vld [vmem:[%s1721_s1 + $0x64] sm:$0xf]  ;;  %v880_v59 = vld [vmem:[%s1721_s1 + $0x68] sm:$0xf0]  ;;  %v983_v61 = vor.u32 %v1176_v53, %v982_v52 }
   0xf   :  { %v891_v56 = vor.u32 %v1151_v51, %v888_v54  ;;  %v846_v62 = vld [vmem:[%s1721_s1 + $0x20] sm:$0xf]  ;;  %v1142_v63 = vld [vmem:[%s1721_s1 + $0x24] sm:$0xf0]  ;;  %v883_v4 = vor.u32 %v1149_v58, %v880_v59  ;;  %v1147_v5 = vld [vmem:[%s1721_s1 + $0x54] sm:$0xf] }
  0x10   :  { %413 = vmatpush.bf16.msra.mxu0 %v863_v42  ;;  %v910_v0 = vld [vmem:[%s1721_s1 + $0xa0] sm:$0xf]  ;;  %v1158_v1 = vld [vmem:[%s1721_s1 + $0xa4] sm:$0xf0]  ;;  %v872_v6 = vld [vmem:[%s1721_s1 + $0x58] sm:$0xf0]  ;;  %v847_v7 = vor.u32 %v1142_v63, %v846_v62 }
  0x11   :  { %474 = vmatpush.bf16.msra.mxu3 %v1023_v43  ;;  %432 = vmatpush.bf16.msra.mxu1 %v927_v47  ;;  %v974_v2 = vld [vmem:[%s1721_s1 + $0x120] sm:$0xf]  ;;  %v1174_v3 = vld [vmem:[%s1721_s1 + $0x124] sm:$0xf0]  ;;  %v911_v8 = vor.u32 %v1158_v1, %v910_v0  ;;  %v838_v10 = vld [vmem:[%s1721_s1 + $0x10] sm:$0xf]  ;;  %v875_v16 = vor.u32 %v1147_v5, %v872_v6 }
  0x12   :  { %451 = vmatpush.bf16.msra.mxu2 %v991_v48  ;;  %v975_v9 = vor.u32 %v1174_v3, %v974_v2  ;;  %v1140_v11 = vld [vmem:[%s1721_s1 + $0x14] sm:$0xf0]  ;;  %v902_v12 = vld [vmem:[%s1721_s1 + $0x90] sm:$0xf]  ;;  %v1145_v17 = vld [vmem:[%s1721_s1 + $0x44] sm:$0xf] }
  0x13   :  { %v1156_v13 = vld [vmem:[%s1721_s1 + $0x94] sm:$0xf0]  ;;  %v966_v14 = vld [vmem:[%s1721_s1 + $0x110] sm:$0xf]  ;;  %v864_v18 = vld [vmem:[%s1721_s1 + $0x48] sm:$0xf0]  ;;  %v839_v19 = vor.u32 %v1140_v11, %v838_v10 }
  0x14   :  { %1044 = vmatmul.msk.bf16.vlgmr.msra.gmra.mxu3 %vm403_vm0, %v1373_v55  ;;  %414 = vmatpush.bf16.msra.mxu0 %v855_v57  ;;  %v1172_v15 = vld [vmem:[%s1721_s1 + $0x114] sm:$0xf0]  ;;  %v830_v20 = vld [vmem:[%s1721_s1] sm:$0xf]  ;;  %v1138_v21 = vld [vmem:[%s1721_s1 + $0x4] sm:$0xf0]  ;;  %v903_v23 = vor.u32 %v1156_v13, %v902_v12  ;;  %v867_v28 = vor.u32 %v1145_v17, %v864_v18 }
  0x15   :  { %486 = vmatpush.bf16.msrb.mxu3 %v891_v56  ;;  %433 = vmatpush.bf16.msra.mxu1 %v919_v60  ;;  %v894_v22 = vld [vmem:[%s1721_s1 + $0x80] sm:$0xf]  ;;  %v967_v24 = vor.u32 %v1172_v15, %v966_v14  ;;  %v1154_v25 = vld [vmem:[%s1721_s1 + $0x84] sm:$0xf0]  ;;  %v1131_v30 = vld [vmem:[%s1722_s0 + $0xc] sm:$0xf0]  ;;  %v831_v36 = vor.u32 %v1138_v21, %v830_v20 }
  0x16   :  { %452 = vmatpush.bf16.msra.mxu2 %v983_v61  ;;  %v958_v26 = vld [vmem:[%s1721_s1 + $0x100] sm:$0xf]  ;;  %v1170_v27 = vld [vmem:[%s1721_s1 + $0x104] sm:$0xf0]  ;;  %v1189_v31 = vld [vmem:[%s1721_s1 + $0x1a4] sm:$0xf]  ;;  %v895_v40 = vor.u32 %v1154_v25, %v894_v22 }
  0x17   :  { %v798_v29 = vld [vmem:[%s1722_s0] sm:$0xf]  ;;  %v1129_v32 = vld [vmem:[%s1722_s0 + $0x4] sm:$0xf]  ;;  %v1040_v33 = vld [vmem:[%s1721_s1 + $0x1a8] sm:$0xf0]  ;;  %v959_v41 = vor.u32 %v1170_v27, %v958_v26 }
  0x18   :  { %415 = vmatpush.bf16.msra.mxu0 %v847_v7  ;;  %v1167_v34 = vld [vmem:[%s1721_s1 + $0xf4] sm:$0xf]  ;;  %v952_v35 = vld [vmem:[%s1721_s1 + $0xf8] sm:$0xf0]  ;;  %v806_v42 = vld [vmem:[%s1722_s0 + $0x8] sm:$0xf]  ;;  %v1043_v45 = vor.u32 %v1189_v31, %v1040_v33  ;;  %v1497_v50 = vor.u32 %v1131_v30, %v798_v29 }
  0x19   :  { %487 = vmatpush.bf16.msrb.mxu3 %v883_v4  ;;  %434 = vmatpush.bf16.msra.mxu1 %v911_v8  ;;  %v800_v37 = vld [vmem:[%s1722_s0 + $0x10] sm:$0xf0]  ;;  %v1016_v39 = vld [vmem:[%s1721_s1 + $0x178] sm:$0xf0]  ;;  %v1132_v43 = vld [vmem:[%s1722_s0 + $0x14] sm:$0xf0]  ;;  %v955_v46 = vor.u32 %v1167_v34, %v952_v35 }
  0x1a   :  { %453 = vmatpush.bf16.msra.mxu2 %v975_v9  ;;  %v1183_v38 = vld [vmem:[%s1721_s1 + $0x174] sm:$0xf]  ;;  %v1134_v44 = vld [vmem:[%s1722_s0 + $0x2c] sm:$0xf]  ;;  %v824_v47 = vld [vmem:[%s1722_s0 + $0x38] sm:$0xf0]  ;;  %v1508_v56 = vor.u32 %v1129_v32, %v800_v37  ;;  %v1510_v57 = vor.u32 %v1132_v43, %v806_v42 }
  0x1b   :  { %v1143_v48 = vld [vmem:[%s1721_s1 + $0x34] sm:$0xf]  ;;  %v856_v49 = vld [vmem:[%s1721_s1 + $0x38] sm:$0xf0]  ;;  %v1019_v51 = vor.u32 %v1183_v38, %v1016_v39  ;;  %v1165_v52 = vld [vmem:[%s1721_s1 + $0xe4] sm:$0xf]  ;;  %v1521_v61 = vor.u32 %v1134_v44, %v824_v47 }
  0x1c   :  { %416 = vmatpush.bf16.msra.mxu0 %v839_v19  ;;  %v944_v53 = vld [vmem:[%s1721_s1 + $0xe8] sm:$0xf0]  ;;  %v1181_v54 = vld [vmem:[%s1721_s1 + $0x164] sm:$0xf]  ;;  %v1187_v59 = vld [vmem:[%s1721_s1 + $0x194] sm:$0xf]  ;;  %v859_v62 = vor.u32 %v1143_v48, %v856_v49 }
  0x1d   :  { %488 = vmatpush.bf16.msrb.mxu3 %v875_v16  ;;  %435 = vmatpush.bf16.msra.mxu1 %v903_v23  ;;  %v1008_v58 = vld [vmem:[%s1721_s1 + $0x168] sm:$0xf0]  ;;  %v1032_v60 = vld [vmem:[%s1721_s1 + $0x198] sm:$0xf0]  ;;  %v947_v63 = vor.u32 %v1165_v52, %v944_v53  ;;  %v1141_v0 = vld [vmem:[%s1721_s1 + $0x24] sm:$0xf] }
  0x1e   :  { %454 = vmatpush.bf16.msra.mxu2 %v967_v24  ;;  %v1011_v1 = vor.u32 %v1181_v54, %v1008_v58  ;;  %v848_v2 = vld [vmem:[%s1721_s1 + $0x28] sm:$0xf0]  ;;  %v1163_v3 = vld [vmem:[%s1721_s1 + $0xd4] sm:$0xf]  ;;  %v936_v4 = vld [vmem:[%s1721_s1 + $0xd8] sm:$0xf0]  ;;  %v1035_v5 = vor.u32 %v1187_v59, %v1032_v60 }
  0x1f   :  { %v1179_v6 = vld [vmem:[%s1721_s1 + $0x154] sm:$0xf]  ;;  %v1000_v7 = vld [vmem:[%s1721_s1 + $0x158] sm:$0xf0]  ;;  %v851_v8 = vor.u32 %v1141_v0, %v848_v2  ;;  %v939_v9 = vor.u32 %v1163_v3, %v936_v4  ;;  %v1161_v12 = vld [vmem:[%s1721_s1 + $0xc4] sm:$0xf] }
  0x20   :  { %417 = vmatpush.bf16.msra.mxu0 %v831_v36  ;;  %v1139_v10 = vld [vmem:[%s1721_s1 + $0x14] sm:$0xf]  ;;  %v840_v11 = vld [vmem:[%s1721_s1 + $0x18] sm:$0xf0]  ;;  %v1003_v13 = vor.u32 %v1179_v6, %v1000_v7  ;;  %v928_v14 = vld [vmem:[%s1721_s1 + $0xc8] sm:$0xf0] }
  0x21   :  { %489 = vmatpush.bf16.msrb.mxu3 %v867_v28  ;;  %436 = vmatpush.bf16.msra.mxu1 %v895_v40  ;;  %v1185_v15 = vld [vmem:[%s1721_s1 + $0x184] sm:$0xf]  ;;  %v1024_v16 = vld [vmem:[%s1721_s1 + $0x188] sm:$0xf0]  ;;  %v843_v20 = vor.u32 %v1139_v10, %v840_v11  ;;  %v931_v21 = vor.u32 %v1161_v12, %v928_v14  ;;  %v814_v24 = vld [vmem:[%s1722_s0 + $0x20] sm:$0xf] }
  0x22   :  { %455 = vmatpush.bf16.msra.mxu2 %v959_v41  ;;  %v1177_v17 = vld [vmem:[%s1721_s1 + $0x144] sm:$0xf]  ;;  %v992_v18 = vld [vmem:[%s1721_s1 + $0x148] sm:$0xf0]  ;;  %v1027_v19 = vor.u32 %v1185_v15, %v1024_v16  ;;  %v1135_v26 = vld [vmem:[%s1722_s0 + $0x2c] sm:$0xf0] }
  0x23   :  { %418 = vmatmul.bf16.vlgmr.msra.gmra.mxu0 %v1497_v50  ;;  %v1137_v22 = vld [vmem:[%s1721_s1 + $0x4] sm:$0xf]  ;;  %v832_v23 = vld [vmem:[%s1721_s1 + $0x8] sm:$0xf0]  ;;  %v995_v25 = vor.u32 %v1177_v17, %v992_v18  ;;  %v1159_v27 = vld [vmem:[%s1721_s1 + $0xb4] sm:$0xf]  ;;  %v815_v37 = vor.u32 %v1135_v26, %v814_v24 }
  0x24   :  { %505 = vmatpush.bf16.msrb.mxu0 %v955_v46  ;;  %437 = vmatmul.bf16.vlgmr.msra.gmra.mxu1 %v1508_v56  ;;  %v920_v28 = vld [vmem:[%s1721_s1 + $0xb8] sm:$0xf0]  ;;  %v1133_v29 = vld [vmem:[%s1722_s0 + $0x24] sm:$0xf]  ;;  %v1175_v30 = vld [vmem:[%s1721_s1 + $0x134] sm:$0xf]  ;;  %v835_v35 = vor.u32 %v1137_v22, %v832_v23 }
  0x25   :  { %524 = vmatpush.bf16.msrb.mxu1 %v1019_v51  ;;  %456 = vmatmul.bf16.vlgmr.msra.gmra.mxu2 %v1510_v57  ;;  %v984_v31 = vld [vmem:[%s1721_s1 + $0x138] sm:$0xf0]  ;;  %v816_v32 = vld [vmem:[%s1722_s0 + $0x30] sm:$0xf0]  ;;  %v822_v33 = vld [vmem:[%s1722_s0 + $0x28] sm:$0xf]  ;;  %v923_v36 = vor.u32 %v1159_v27, %v920_v28 }
  0x26   :  { %548 = vmatpush.bf16.msrb.mxu2 %v1043_v45  ;;  %1045 = vmatmul.msk.bf16.gmra.mxu3 %vm403_vm0, %v1521_v61  ;;  %v1136_v34 = vld [vmem:[%s1722_s0 + $0x34] sm:$0xf0]  ;;  %v987_v38 = vor.u32 %v1175_v30, %v984_v31  ;;  %v1157_v39 = vld [vmem:[%s1721_s1 + $0xa4] sm:$0xf]  ;;  %v912_v40 = vld [vmem:[%s1721_s1 + $0xa8] sm:$0xf0]  ;;  %v819_v41 = vor.u32 %v1133_v29, %v816_v32 }
  0x27   :  { %490 = vmatpush.bf16.msrb.mxu3 %v859_v62  ;;  %v823_v42 = vor.u32 %v1136_v34, %v822_v33  ;;  %v1173_v43 = vld [vmem:[%s1721_s1 + $0x124] sm:$0xf]  ;;  %v976_v44 = vld [vmem:[%s1721_s1 + $0x128] sm:$0xf0]  ;;  %v915_v45 = vor.u32 %v1157_v39, %v912_v40  ;;  %v1155_v47 = vld [vmem:[%s1721_s1 + $0x94] sm:$0xf] }
  0x28   :  { %506 = vmatpush.bf16.msrb.mxu0 %v947_v63  ;;  %v979_v46 = vor.u32 %v1173_v43, %v976_v44  ;;  %v904_v48 = vld [vmem:[%s1721_s1 + $0x98] sm:$0xf0]  ;;  %v1171_v49 = vld [vmem:[%s1721_s1 + $0x114] sm:$0xf]  ;;  %v1153_v54 = vld [vmem:[%s1721_s1 + $0x84] sm:$0xf] }
  0x29   :  { %525 = vmatpush.bf16.msrb.mxu1 %v1011_v1  ;;  %v968_v51 = vld [vmem:[%s1721_s1 + $0x118] sm:$0xf0]  ;;  %v907_v52 = vor.u32 %v1155_v47, %v904_v48  ;;  %v896_v58 = vld [vmem:[%s1721_s1 + $0x88] sm:$0xf0]  ;;  %v1169_v59 = vld [vmem:[%s1721_s1 + $0x104] sm:$0xf] }
  0x2a   :  { %549 = vmatpush.bf16.msrb.mxu2 %v1035_v5  ;;  %v971_v53 = vor.u32 %v1171_v49, %v968_v51  ;;  %v899_v60 = vor.u32 %v1153_v54, %v896_v58  ;;  %v1198_v63 = vld [vmem:[%s1724_s3 + $0x38] sm:$0xff]  ;;  %v1193_v1 = vld [vmem:[%s1724_s3 + $0x10] sm:$0xff]  ;;  %v1192_v5 = vld [vmem:[%s1724_s3 + $0x8] sm:$0xff] }
  0x2b   :  { %491 = vmatpush.bf16.msrb.mxu3 %v851_v8  ;;  %v1194_v0 = vld [vmem:[%s1724_s3 + $0x18] sm:$0xff]  ;;  %v1191_v6 = vld [vmem:[%s1724_s3] sm:$0xff]  ;;  %v1201_v33 = vld [vmem:[%s1724_s3 + $0x50] sm:$0xff] }
  0x2c   :  { %507 = vmatpush.bf16.msrb.mxu0 %v939_v9  ;;  %v89_v10 = vld [vmem:[%s1725_s2] sm:$0x3]  ;;  %v1200_v39 = vld [vmem:[%s1724_s3 + $0x48] sm:$0xff] }
  0x2d   :  { %526 = vmatpush.bf16.msrb.mxu1 %v1003_v13  ;;  %v91_v12 = vperm.slane %v89_v10, 0  ;;  %v1199_v48 = vld [vmem:[%s1724_s3 + $0x40] sm:$0xff] }
  0x2e   :  { %550 = vmatpush.bf16.msrb.mxu2 %v1027_v19 }
  0x2f   :  { %492 = vmatpush.bf16.msrb.mxu3 %v843_v20 }
  0x30   :  { %508 = vmatpush.bf16.msrb.mxu0 %v931_v21 }
  0x31   :  { %527 = vmatpush.bf16.msrb.mxu1 %v995_v25  ;;  %v1202_v25 = vld [vmem:[%s1724_s3 + $0x58] sm:$0xff] }
  0x33   :  { %493 = vmatpush.bf16.msrb.mxu3 %v835_v35  ;;  %423 = vmatmul.bf16.gmra.mxu0 %v815_v37 }
  0x34   :  { %509 = vmatpush.bf16.msrb.mxu0 %v923_v36  ;;  %442 = vmatmul.bf16.gmra.mxu1 %v819_v41 }
  0x35   :  { %528 = vmatpush.bf16.msrb.mxu1 %v987_v38  ;;  %461 = vmatmul.bf16.gmra.mxu2 %v823_v42 }
  0x36   :  { %494 = vmatmul.bf16.vlgmr.msrb.gmra.mxu3 %v1497_v50  ;;  %v960_v50 = vld [vmem:[%s1721_s1 + $0x108] sm:$0xf0] }
  0x37   :  { %v963_v62 = vor.u32 %v1169_v59, %v960_v50  ;;  %682 = vmatpush.bf16.msra.mxu3 %v1198_v63  ;;  %v92_v50 = vperm.slane %v89_v10, 1 }
  0x38   :  { %510 = vmatpush.bf16.msrb.mxu0 %v915_v45 }
  0x39   :  { %529 = vmatpush.bf16.msrb.mxu1 %v979_v46 }
  0x3c   :  { %511 = vmatpush.bf16.msrb.mxu0 %v907_v52 }
  0x3d   :  { %530 = vmatpush.bf16.msrb.mxu1 %v971_v53 }
  0x40   :  { %512 = vmatpush.bf16.msrb.mxu0 %v899_v60 }
  0x41   :  { %531 = vmatpush.bf16.msrb.mxu1 %v963_v62 }
  0x43   :  { %513 = vmatmul.bf16.vlgmr.msrb.gmra.mxu0 %v1508_v56  ;;  %v1197_v56 = vld [vmem:[%s1724_s3 + $0x30] sm:$0xff] }
  0x44   :  { %532 = vmatmul.bf16.vlgmr.msrb.gmra.mxu1 %v1510_v57  ;;  %683 = vmatpush.bf16.msra.mxu3 %v1197_v56  ;;  %v1195_v57 = vld [vmem:[%s1724_s3 + $0x20] sm:$0xff] }
  0x45   :  { %1046 = vmatmul.msk.bf16.vlgmr.msrb.gmra.mxu2 %vm403_vm0, %v1373_v55  ;;  %v1196_v55 = vld [vmem:[%s1724_s3 + $0x28] sm:$0xff] }
  0x46   :  { %499 = vmatmul.bf16.gmra.mxu3 %v815_v37 }
  0x48   :  { %684 = vmatpush.bf16.msra.mxu3 %v1196_v55 }
  0x4c   :  { %685 = vmatpush.bf16.msra.mxu3 %v1195_v57 }
  0x50   :  { %686 = vmatpush.bf16.msra.mxu3 %v1194_v0 }
  0x53   :  { %518 = vmatmul.bf16.gmra.mxu0 %v819_v41 }
  0x54   :  { %537 = vmatmul.bf16.gmra.mxu1 %v823_v42  ;;  %687 = vmatpush.bf16.msra.mxu3 %v1193_v1 }
  0x55   :  { %1047 = vmatmul.msk.bf16.gmra.mxu2 %vm403_vm0, %v1521_v61 }
  0x58   :  { %688 = vmatpush.bf16.msra.mxu3 %v1192_v5 }
  0x5c   :  { %689 = vmatpush.bf16.msra.mxu3 %v1191_v6 }
  0x60   :  { %699 = vmatpush.bf16.msrb.mxu3 %v1202_v25 }
  0x64   :  { %700 = vmatpush.bf16.msrb.mxu3 %v1201_v33 }
  0x68   :  { %701 = vmatpush.bf16.msrb.mxu3 %v1200_v39 }
  0x6c   :  { %702 = vmatpush.bf16.msrb.mxu3 %v1199_v48 }
  0x97   :  { %v476_v61 = vpop.f32.mrf.mxu3 }
  0x9f   :  { %v478_v2 = vpop.f32.mrf.mxu3 }
  0xa0   :  { %v419_v3 = vpop.f32.mrf.mxu0 }
  0xa1   :  { %v438_v4 = vpop.f32.mrf.mxu1  ;;  %v420_v14 = vadd.f32 %v419_v3, %v91_v12 }
  0xa3   :  { %v439_v20 = vadd.f32 %v438_v4, %v420_v14 }
  0xa8   :  { %v457_v7 = vpop.f32.mrf.mxu2  ;;  %v421_v8 = vpop.f32.mrf.mxu0 }
  0xa9   :  { %v481_v9 = vpop.f32.mrf.mxu3  ;;  %v440_v11 = vpop.f32.mrf.mxu1  ;;  %v422_v15 = vadd.f32 %v421_v8, %v91_v12  ;;  %v458_v26 = vadd.f32 %v457_v7, %v439_v20 }
  0xab   :  { %v441_v21 = vadd.f32 %v440_v11, %v422_v15  ;;  %v477_v34 = vadd.f32 %v476_v61, %v458_v26  ;;  %v1210_v26 = vld [vmem:[%s1727_s5 + $0x38] sm:$0xff] }
  0xac   :  { %778 = vmatpush.bf16.msra.mxu0 %v1210_v26 }
  0xad   :  { %v562_v40 = vmax.f32 %v477_v34, 0.0  ;;  %v1203_v34 = vld [vmem:[%s1727_s5] sm:$0xff] }
  0xb0   :  { %v459_v13 = vpop.f32.mrf.mxu2  ;;  %v424_v16 = vpop.f32.mrf.mxu0 }
  0xb1   :  { %v483_v17 = vpop.f32.mrf.mxu3  ;;  %v425_v18 = vadd.f32 %v424_v16, %v91_v12  ;;  %v443_v19 = vpop.f32.mrf.mxu1  ;;  %v460_v23 = vadd.f32 %v459_v13, %v441_v21 }
  0xb3   :  { %v444_v22 = vadd.f32 %v443_v19, %v425_v18  ;;  %v479_v31 = vadd.f32 %v478_v2, %v460_v23 }
  0xb5   :  { %v564_v36 = vmax.f32 %v479_v31, 0.0  ;;  %v1205_v31 = vld [vmem:[%s1727_s5 + $0x10] sm:$0xff] }
  0xb7   :  { %v570_v46 = vmax.f32 %v562_v40, %v564_v36  ;;  %v1211_v36 = vld [vmem:[%s1723_s4] ss:$0 sm:$0xff] }
  0xb8   :  { %v462_v24 = vpop.f32.mrf.mxu2  ;;  %v426_v28 = vpop.f32.mrf.mxu0 }
  0xb9   :  { %v463_v27 = vadd.f32 %v462_v24, %v444_v22  ;;  %v495_v29 = vpop.f32.mrf.mxu3  ;;  %v445_v30 = vpop.f32.mrf.mxu1  ;;  %v427_v32 = vadd.f32 %v426_v28, %v91_v12  ;;  %v1208_v28 = vld [vmem:[%s1727_s5 + $0x28] sm:$0xff] }
  0xba   :  { %v496_v62 = vadd.f32 %v495_v29, %v92_v50  ;;  %v1207_v29 = vld [vmem:[%s1727_s5 + $0x20] sm:$0xff] }
  0xbb   :  { %v482_v35 = vadd.f32 %v481_v9, %v463_v27  ;;  %v446_v37 = vadd.f32 %v445_v30, %v427_v32  ;;  %v1209_v27 = vld [vmem:[%s1727_s5 + $0x30] sm:$0xff]  ;;  %v1206_v30 = vld [vmem:[%s1727_s5 + $0x18] sm:$0xff]  ;;  %v1204_v32 = vld [vmem:[%s1727_s5 + $0x8] sm:$0xff] }
  0xbc   :  { %779 = vmatpush.bf16.msra.mxu0 %v1209_v27 }
  0xbd   :  { %v566_v41 = vmax.f32 %v482_v35, 0.0 }
  0xbf   :  { %v572_v49 = vmax.f32 %v570_v46, %v566_v41 }
  0xc0   :  { %v464_v38 = vpop.f32.mrf.mxu2  ;;  %v514_v43 = vpop.f32.mrf.mxu0  ;;  %780 = vmatpush.bf16.msra.mxu0 %v1208_v28 }
  0xc1   :  { %v465_v42 = vadd.f32 %v464_v38, %v446_v37  ;;  %v497_v44 = vpop.f32.mrf.mxu3  ;;  %v533_v45 = vpop.f32.mrf.mxu1  ;;  %v515_v61 = vadd.f32 %v514_v43, %v496_v62  ;;  %v1212_v43 = vld [vmem:[%s1726_s6] ss:$0 sm:$0xff] }
  0xc2   :  { %v498_v55 = vadd.f32 %v497_v44, %v92_v50 }
  0xc3   :  { %v484_v47 = vadd.f32 %v483_v17, %v465_v42  ;;  %v534_v4 = vadd.f32 %v533_v45, %v515_v61 }
  0xc4   :  { %781 = vmatpush.bf16.msra.mxu0 %v1207_v29 }
  0xc5   :  { %v568_v51 = vmax.f32 %v484_v47, 0.0 }
  0xc7   :  { %v574_v52 = vmax.f32 %v572_v49, %v568_v51 }
  0xc8   :  { %v552_v53 = vpop.f32.mrf.mxu2  ;;  %v516_v58 = vpop.f32.mrf.mxu0  ;;  %782 = vmatpush.bf16.msra.mxu0 %v1206_v30 }
  0xc9   :  { %v576_v54 = vpack.c.bf16 %v574_v52, %v574_v52  ;;  %v535_v59 = vpop.f32.mrf.mxu1  ;;  %v500_v60 = vpop.f32.mrf.mxu3  ;;  %v517_v0 = vadd.f32 %v516_v58, %v498_v55  ;;  %v553_v10 = vadd.f32 %v552_v53, %v534_v4 }
  0xca   :  { %v501_v63 = vadd.f32 %v500_v60, %v92_v50 }
  0xcb   :  { %690 = vmatmul.bf16.vlgmr.msra.gmra.mxu3 %v576_v54  ;;  %v536_v5 = vadd.f32 %v535_v59, %v517_v0  ;;  %v563_v16 = vmax.f32 %v553_v10, 0.0 }
  0xcc   :  { %783 = vmatpush.bf16.msra.mxu0 %v1205_v31 }
  0xd0   :  { %v554_v56 = vpop.f32.mrf.mxu2  ;;  %v519_v57 = vpop.f32.mrf.mxu0  ;;  %784 = vmatpush.bf16.msra.mxu0 %v1204_v32 }
  0xd1   :  { %v520_v1 = vadd.f32 %v519_v57, %v501_v63  ;;  %v538_v2 = vpop.f32.mrf.mxu1  ;;  %v502_v3 = vpop.f32.mrf.mxu3  ;;  %v555_v8 = vadd.f32 %v554_v56, %v536_v5 }
  0xd2   :  { %v503_v9 = vadd.f32 %v502_v3, %v92_v50 }
  0xd3   :  { %v539_v6 = vadd.f32 %v538_v2, %v520_v1  ;;  %v565_v14 = vmax.f32 %v555_v8, 0.0 }
  0xd4   :  { %785 = vmatpush.bf16.msra.mxu0 %v1203_v34 }
  0xd5   :  { %v571_v20 = vmax.f32 %v563_v16, %v565_v14 }
  0xd8   :  { %v557_v7 = vpop.f32.mrf.mxu2  ;;  %v521_v11 = vpop.f32.mrf.mxu0 }
  0xd9   :  { %v558_v12 = vadd.f32 %v557_v7, %v539_v6  ;;  %v522_v13 = vadd.f32 %v521_v11, %v503_v9  ;;  %v540_v15 = vpop.f32.mrf.mxu1 }
  0xdb   :  { %v567_v17 = vmax.f32 %v558_v12, 0.0  ;;  %v541_v18 = vadd.f32 %v540_v15, %v522_v13 }
  0xdd   :  { %v573_v22 = vmax.f32 %v571_v20, %v567_v17 }
  0xe0   :  { %v559_v19 = vpop.f32.mrf.mxu2 }
  0xe1   :  { %v560_v21 = vadd.f32 %v559_v19, %v541_v18 }
  0xe3   :  { %v569_v23 = vmax.f32 %v560_v21, 0.0 }
  0xe5   :  { %v575_v24 = vmax.f32 %v573_v22, %v569_v23 }
  0xe7   :  { %v577_v25 = vpack.c.bf16 %v575_v24, %v575_v24 }
  0xe9   :  { %1096 = vmatmul.msk.bf16.vlgmr.msrb.gmra.mxu3 %vm678_vm1, %v577_v25 }
 0x14e   :  { %v691_v33 = vpop.f32.mrf.mxu3 }
 0x14f   :  { %v692_v37 = vadd.f32 %v1211_v36, %v691_v33 }
 0x156   :  { %v693_v35 = vpop.f32.mrf.mxu3 }
 0x16c   :  { %v704_v38 = vpop.f32.mrf.mxu3 }
 0x16d   :  { %v705_v39 = vadd.f32 %v704_v38, %v692_v37 }
 0x16f   :  { %v708_v40 = vmax.f32 %v705_v39, 0.0 }
 0x171   :  { %v709_v41 = vpack.c.bf16 %v708_v40, %v708_v40 }
 0x173   :  { %786 = vmatmul.bf16.vlgmr.msra.gmra.mxu0 %v709_v41 }
 0x174   :  { %v706_v42 = vpop.f32.mrf.mxu3 }
 0x1f0   :  { %v787_v44 = vpop.f32.mrf.mxu0 }
 0x1f1   :  { %v788_v45 = vadd.f32 %v1212_v43, %v787_v44 }
 0x1f3   :  { %791 = vst [vmem:[%s1728_s7] sm:$0xff] %v788_v45 }
 0x1f8   :  { %v789_v46 = vpop.f32.mrf.mxu0 }

</bundles_post_ra>
